<compile_context>
chip_gen: v7x
topology: tpu7x:2x2x1
jax: 0.10.0
libtpu: 0.0.40
codegen_flags: <defaults>
</compile_context>

<pallas_src>
import functools

import jax
import jax.numpy as jnp
from jax.experimental import pallas as pl
from jax.experimental.pallas import tpu as pltpu


def _round_up(n, m):
    return -(-n // m) * m


def _fused_mlp_kernel(x_ref, p_ref, out_ref, *, n_features, f_pad, hidden,
                      h_pad, n_out):
    """Shared-FC + ReLU + fused (actor|critic) head on one batch tile.

    Packed-parameter slab row layout (all offsets sublane(8)-aligned so every
    static slice below is a zero-cost view):
      rows [0, F)                : w1      [F, H]
      rows [F_pad, F_pad+H)      : w_head  [H, No]   (actor cols | critic col)
      row   F_pad+H_pad          : b1      [1, H]
      row   F_pad+H_pad+1        : b_head  [1, No]
      (bias region padded to 8 rows)
    """
    F, Fp, H, Hp, No = n_features, f_pad, hidden, h_pad, n_out
    bias_row = Fp + Hp

    w1 = p_ref[0:F, 0:H]
    wh = p_ref[Fp:Fp + H, 0:No]
    b1 = p_ref[bias_row:bias_row + 1, 0:H]
    bh = p_ref[bias_row + 1:bias_row + 2, 0:No]

    x = x_ref[...]
    h = jnp.dot(x, w1, preferred_element_type=jnp.float32) + b1
    h = jnp.maximum(h, 0.0)                                   # ReLU on VPU
    out = jnp.dot(h, wh, preferred_element_type=jnp.float32) + bh
    out_ref[...] = out.astype(out_ref.dtype)


def pack_params(params, dtype=jnp.float32):
    """Pack all weights/biases into ONE [F_pad+H_pad+8, max(H, A+1)] slab.

    Build this ONCE when the parameters change (outside the per-step hot
    path); the forward takes the packed slab directly, so the only per-call
    device work is the fused Pallas kernel.
    """
    w1, b1, wa, ba, wc, bc = (params["w1"], params["b1"], params["wa"],
                              params["ba"], params["wc"], params["bc"])
    F, H = w1.shape
    A = wa.shape[1]
    No = A + 1
    Fp, Hp = _round_up(F, 8), _round_up(H, 8)
    slab_w = max(H, No)
    R = Fp + Hp + 8                       # 8-row bias region keeps layout aligned

    def put(slab, row, a):
        a = jnp.asarray(a, dtype)
        return slab.at[row:row + a.shape[0], :a.shape[1]].set(a)

    slab = jnp.zeros((R, slab_w), dtype)
    slab = put(slab, 0, w1)                                       # [F, H]
    slab = put(slab, Fp, jnp.concatenate([wa, wc], axis=1))       # [H, No]
    slab = put(slab, Fp + Hp, b1.reshape(1, H))                   # [1, H]
    slab = put(slab, Fp + Hp + 1,
               jnp.concatenate([ba.reshape(-1), bc.reshape(-1)]).reshape(1, No))
    return slab


def prospective_forager_forward(x, p_slab, *, n_actions, hidden=32,
                                block_b=4096):
    """Fused actor/critic forward.

    x: [B, n_features]; p_slab: output of pack_params() (built once, cached).
    Returns (action_logits [B, n_actions], state_values [B, 1]) in float32.
    """
    B, F = x.shape
    H, A = hidden, n_actions
    No = A + 1
    Fp, Hp = _round_up(F, 8), _round_up(H, 8)
    R, slab_w = p_slab.shape
    assert R == Fp + Hp + 8 and slab_w == max(H, No), "p_slab layout mismatch"

    if x.dtype not in (jnp.float32, jnp.bfloat16):
        x = x.astype(jnp.float32)        # match PyTorch's .to(float32)

    # ---- batch tiling -------------------------------------------------------
    # Small B: one block (the ~0.35us per-grid-step cost dominates; splitting
    # only hurts).  Large B: tiles up to block_b rows, at least 2 blocks so the
    # "parallel" axis shards over v7x's two TensorCores, preferring a
    # multiple-of-8 tile that divides B so no jnp.pad copy is needed.
    if B <= max(256, block_b // 8):
        tb = B
    else:
        tb = min(block_b, _round_up(pl.cdiv(B, 2), 8))
        for cand in range(tb, 7, -8):            # nearest mult-of-8 divisor of B
            if B % cand == 0:
                tb = cand
                break

    n_blocks = pl.cdiv(B, tb)
    B_pad = n_blocks * tb
    if n_blocks > 1:
        assert tb % 8 == 0, "batch tile must be a multiple of 8 when gridded"
    if B_pad != B:
        # Rare fallback (no mult-of-8 divisor near the target tile).  Padded
        # rows produce relu(b1)@wh + bh garbage; they are dropped by the final
        # [:B] slice -- never consume the padded buffer directly.
        x = jnp.pad(x, ((0, B_pad - B), (0, 0)))

    x_spec = pl.BlockSpec((tb, F), lambda i: (i, 0))
    if n_blocks >= 4:
        # Tiny per-step transfers are latency- (not bandwidth-) bound; a third
        # buffer hides the DMA latency between grid steps.
        x_spec = pl.BlockSpec((tb, F), lambda i: (i, 0),
                              pipeline_mode=pl.Buffered(3))

    kernel = functools.partial(_fused_mlp_kernel, n_features=F, f_pad=Fp,
                               hidden=H, h_pad=Hp, n_out=No)

    fused = pl.pallas_call(
        kernel,
        out_shape=jax.ShapeDtypeStruct((B_pad, No), jnp.float32),
        grid=(n_blocks,),
        in_specs=[
            x_spec,                                            # batch tile
            pl.BlockSpec((R, slab_w), lambda i: (0, 0)),       # resident params
        ],
        out_specs=pl.BlockSpec((tb, No), lambda i: (i, 0)),
        compiler_params=pltpu.CompilerParams(
            dimension_semantics=("parallel",)),     # shard batch over TCs (v7x)
        cost_estimate=pl.CostEstimate(
            flops=2 * B_pad * (F * H + H * No),
            transcendentals=0,
            bytes_accessed=(x.dtype.itemsize * B_pad * F
                            + p_slab.dtype.itemsize * p_slab.size
                            + 4 * B_pad * No)),
    )(x, p_slab)

    fused = fused[:B]
    return fused[:, :A], fused[:, A:A + 1]


def init_params(key, n_features, n_actions, hidden=32):
    """Deterministic init mimicking the PyTorch module's init scheme."""
    k1, k2, k3, k4, k5, k6 = jax.random.split(key, 6)
    # kaiming_normal_ (fan_in, relu): std = sqrt(2 / fan_in)
    w1 = jax.random.normal(k1, (n_features, hidden), jnp.float32) * jnp.sqrt(
        2.0 / n_features)
    # xavier_uniform_: limit = sqrt(6 / (fan_in + fan_out))
    lim_a = jnp.sqrt(6.0 / (hidden + n_actions))
    wa = jax.random.uniform(k2, (hidden, n_actions), jnp.float32, -lim_a, lim_a)
    lim_c = jnp.sqrt(6.0 / (hidden + 1))
    wc = jax.random.uniform(k3, (hidden, 1), jnp.float32, -lim_c, lim_c)
    # PyTorch Linear default bias init: uniform(-1/sqrt(fan_in), 1/sqrt(fan_in))
    b1 = jax.random.uniform(k4, (hidden,), jnp.float32,
                            -1.0 / jnp.sqrt(n_features), 1.0 / jnp.sqrt(n_features))
    ba = jax.random.uniform(k5, (n_actions,), jnp.float32,
                            -1.0 / jnp.sqrt(hidden), 1.0 / jnp.sqrt(hidden))
    bc = jax.random.uniform(k6, (1,), jnp.float32,
                            -1.0 / jnp.sqrt(hidden), 1.0 / jnp.sqrt(hidden))
    return {"w1": w1, "b1": b1, "wa": wa, "ba": ba, "wc": wc, "bc": bc}


def _reference_forward(x, params):
    h = jnp.maximum(x @ params["w1"] + params["b1"], 0.0)
    logits = h @ params["wa"] + params["ba"]
    values = h @ params["wc"] + params["bc"]
    return logits, values


if __name__ == "__main__":
    # Small shapes consistent with the module: n_envs (batch) = 8,
    # n_features = 16, hidden = 32, n_actions = 4.
    n_envs, n_features, n_actions, hidden = 8, 16, 4, 32

    key = jax.random.PRNGKey(0)
    pkey, xkey = jax.random.split(key)
    params = init_params(pkey, n_features, n_actions, hidden)
    x = jax.random.normal(xkey, (n_envs, n_features), jnp.float32)

    # Pack parameters ONCE (outside the per-step hot path).
    p_slab = jax.block_until_ready(pack_params(params))

    fwd = jax.jit(functools.partial(prospective_forager_forward,
                                    n_actions=n_actions, hidden=hidden))
    logits, values = fwd(x, p_slab)
    jax.block_until_ready((logits, values))

    ref_logits, ref_values = _reference_forward(x, params)
    assert logits.shape == (n_envs, n_actions)
    assert values.shape == (n_envs, 1)
    assert jnp.allclose(logits, ref_logits, atol=1e-5, rtol=1e-5)
    assert jnp.allclose(values, ref_values, atol=1e-5, rtol=1e-5)

    # TODO(synk): select_action (Categorical sampling), get_losses (GAE loop),
    # get_future_reward (env rollouts) and Adam/grad-clip updates are training
    # and sampling logic outside the forward hot path; not implemented here.

    print("KERNEL_OK")
</pallas_src>

<mosaic_0001>
module attributes {stable_mosaic.version = 11 : i64} {
  func.func @_fused_mlp_kernel(%arg0: i32, %arg1: memref<8x16xf32, #tpu.memory_space<vmem>>, %arg2: memref<56x32xf32, #tpu.memory_space<vmem>>, %arg3: memref<8x5xf32, #tpu.memory_space<vmem>>) attributes {dimension_semantics = [#tpu.dimension_semantics<parallel>], iteration_bounds = array<i64: 1>, scalar_prefetch = 0 : i64, scratch_operands = 0 : i64, tpu.core_type = #tpu.core_type<tc>, window_params = [{transform_indices = @transform_0, window_bounds = array<i64: 8, 16>}, {pipeline_mode = #tpu.pipeline_mode<synchronous>, transform_indices = @transform_1, window_bounds = array<i64: 56, 32>}, {transform_indices = @transform_2, window_bounds = array<i64: 8, 5>}]} {
    %c0 = arith.constant 0 : index
    %c0_0 = arith.constant 0 : index
    %0 = vector.load %arg2[%c0, %c0_0] : memref<56x32xf32, #tpu.memory_space<vmem>>, vector<16x32xf32>
    %c16 = arith.constant 16 : index
    %c0_1 = arith.constant 0 : index
    %1 = vector.load %arg2[%c16, %c0_1] : memref<56x32xf32, #tpu.memory_space<vmem>>, vector<32x5xf32>
    %c48 = arith.constant 48 : index
    %c0_2 = arith.constant 0 : index
    %2 = vector.load %arg2[%c48, %c0_2] : memref<56x32xf32, #tpu.memory_space<vmem>>, vector<1x32xf32>
    %c49 = arith.constant 49 : index
    %c0_3 = arith.constant 0 : index
    %3 = vector.load %arg2[%c49, %c0_3] : memref<56x32xf32, #tpu.memory_space<vmem>>, vector<1x5xf32>
    %c0_4 = arith.constant 0 : index
    %c0_5 = arith.constant 0 : index
    %4 = vector.load %arg1[%c0_4, %c0_5] : memref<8x16xf32, #tpu.memory_space<vmem>>, vector<8x16xf32>
    %cst = arith.constant dense<0.000000e+00> : vector<8x32xf32>
    %5 = tpu.matmul %4, %0, %cst {dimension_numbers = #tpu.dot_dimension_numbers<[1], [0], [0], [1], [0, 0, 1, 1], [], []>} : vector<8x16xf32>, vector<16x32xf32>, vector<8x32xf32> -> vector<8x32xf32>
    %6 = vector.broadcast %2 : vector<1x32xf32> to vector<8x32xf32>
    %7 = arith.addf %5, %6 : vector<8x32xf32>
    %cst_6 = arith.constant 0.000000e+00 : f32
    %8 = vector.broadcast %cst_6 : f32 to vector<8x32xf32>
    %9 = arith.maximumf %7, %8 : vector<8x32xf32>
    %cst_7 = arith.constant dense<0.000000e+00> : vector<8x5xf32>
    %10 = tpu.matmul %9, %1, %cst_7 {dimension_numbers = #tpu.dot_dimension_numbers<[1], [0], [0], [1], [0, 0, 1, 1], [], []>} : vector<8x32xf32>, vector<32x5xf32>, vector<8x5xf32> -> vector<8x5xf32>
    %11 = vector.broadcast %3 : vector<1x5xf32> to vector<8x5xf32>
    %12 = arith.addf %10, %11 : vector<8x5xf32>
    %c0_8 = arith.constant 0 : index
    %c0_9 = arith.constant 0 : index
    %13 = vector.load %arg3[%c0_8, %c0_9] : memref<8x5xf32, #tpu.memory_space<vmem>>, vector<8x5xf32>
    tpu.vector_store %arg3[%c0_8, %c0_9], %12 {strides = array<i32>} : memref<8x5xf32, #tpu.memory_space<vmem>>, vector<8x5xf32>,
    return
  }
  func.func @transform_0(%arg0: i32) -> (i32, i32) {
    %c0_i32 = arith.constant 0 : i32
    %c0_i32_0 = arith.constant 0 : i32
    return %arg0, %c0_i32 : i32, i32
  }
  func.func @transform_1(%arg0: i32) -> (i32, i32) {
    %c0_i32 = arith.constant 0 : i32
    %c0_i32_0 = arith.constant 0 : i32
    %c0_i32_1 = arith.constant 0 : i32
    return %c0_i32, %c0_i32_0 : i32, i32
  }
  func.func @transform_2(%arg0: i32) -> (i32, i32) {
    %c0_i32 = arith.constant 0 : i32
    %c0_i32_0 = arith.constant 0 : i32
    return %arg0, %c0_i32 : i32, i32
  }
}

</mosaic_0001>

<bundles_post_ra>
// kernel: prospective_forager_forward.1
= control target key start
LH: loop header
LB: loop body
LE: loop exit
PB: predicated region body
PF: predicated region fallthrough
CT: control target
= control target key end

     0   :  { %v225_v0 = vmov 0.0|0.0   ;;  %vm226_vm0 = vmmov 0   ;;  %v227_v3 = vmov 0.0   ;;  %vm24_vm1 = vcmask 130048   ;;  %s273_s1 = inlined_call_operand.vmem [shape: f32[56,32], index: 1, kind: input, shape index: {}]   ;;  %s274_s0 = inlined_call_operand.vmem [shape: f32[8,16], index: 0, kind: input, shape index: {}]   ;;  %s275_s2 = inlined_call_operand.vmem [shape: f32[8,5], index: 2, kind: output, shape index: {}]  }
   0x1   :  { %213 = vmatprep.subr.bf16.mxu0 %v225_v0  ;;  %v11_v1 = vld [vmem:[%s273_s1] sm:$0xff]  ;;  %v12_v2 = vld [vmem:[%s273_s1 + $0x8] sm:$0xff]  ;;  %199 = vmatprep.mubr.msk.f32.mxu0 %vm226_vm0, %v227_v3  ;;  %v13_v5 = vld [vmem:[%s273_s1 + $0x10] sm:$0xff]  ;;  %vm103_vm2 = vcmask 261120   ;;  %vm177_vm3 = vcmask 39936  }
   0x2   :  { %v214_v4 = vpack.c.bf16 %v12_v2, %v11_v1  ;;  %216 = vmatprep.subr.bf16.mxu1 %v225_v0  ;;  %v14_v6 = vld [vmem:[%s273_s1 + $0x18] sm:$0xff]  ;;  %210 = vmatprep.mubr.msk.f32.mxu1 %vm226_vm0, %v227_v3  ;;  %v19_v8 = vld [vmem:[%s274_s0] sm:$0xff]  ;;  %v16_v10 = vld [vmem:[%s273_s1 + $0x28] sm:$0xff] }
   0x3   :  { %v217_v7 = vpack.c.bf16 %v14_v6, %v13_v5  ;;  %v15_v9 = vld [vmem:[%s273_s1 + $0x20] sm:$0xff]  ;;  %v183_v12 = vld [vmem:[%s273_s1 + $0x30] ss:$0 sm:$0xff]  ;;  %v185_v17 = vld [vmem:[%s273_s1 + $0x31] ss:$0 sm:$0xff] }
   0x4   :  { %215 = vmatpush3.bf16.msra.mxu0 %v214_v4  ;;  %v220_v11 = vpack.c.bf16 %v16_v10, %v15_v9 }
   0x5   :  { %218 = vmatpush3.bf16.msra.mxu1 %v217_v7 }
   0x6   :  { %219 = vmatprep.subr.bf16.mxu1 %v225_v0 }
   0x7   :  { %200 = vmatmul.mubr.msk.f32.vlgmr.msra.gmra.mrb[0].mxu0 %vm24_vm1, %v19_v8 }
   0x9   :  { %221 = vmatpush3.bf16.msra.mxu1 %v220_v11 }
  0xda   :  { %v94_v13 = vpop.f32.mrb[0].mxu0 }
  0xdb   :  { %v95_v14 = vadd.f32 %v183_v12, %v94_v13  ;;  %v201_v15 = vpop.f32.mrb[1].mxu0 }
  0xdd   :  { %v98_v16 = vmax.f32 %v95_v14, 0.0 }
  0xdf   :  { %211 = vmatmul.mubr.msk.f32.vlgmr.msra.gmra.mrb[0].mxu1 %vm103_vm2, %v98_v16 }
 0x1b2   :  { %v173_v18 = vpop.f32.mrb[0].mxu1 }
 0x1b3   :  { %v174_v19 = vadd.f32 %v185_v17, %v173_v18  ;;  %v212_v20 = vpop.f32.mrb[1].mxu1 }
 0x1b5   :  { %178 = vst.msk [vmem:[%s275_s2] sm:$0xff] %vm177_vm3, %v174_v19 }

</bundles_post_ra>
